<compile_context>
chip_gen: v7x
topology: tpu7x:2x2x1
jax: 0.10.0
libtpu: 0.0.40
codegen_flags: <defaults>
</compile_context>

<pallas_src>
import itertools

import jax
import jax.numpy as jnp
from jax.experimental import pallas as pl
from jax.experimental.pallas import tpu as pltpu


def _round_up(x, m):
    return (x + m - 1) // m * m


def _pick_m_tile(dhw_pad, m_tile_max):
    """Largest multiple of 128 that divides dhw_pad and is <= m_tile_max."""
    best = 128
    t = 128
    limit = min(dhw_pad, m_tile_max)
    while t <= limit:
        if dhw_pad % t == 0:
            best = t
        t += 128
    return best


def _im2col(x_ndhwc, k, dilation):
    """(N, D, H, W, Cin) -> (N, k^3*Cin, D*H*W) for a stride-1 'same' dilated conv.

    Rows are tap-major / channel-minor, matching w.reshape(k^3*Cin, Cout).
    """
    N, D, H, W, Cin = x_ndhwc.shape
    if k == 1:
        return jnp.moveaxis(x_ndhwc, -1, 1).reshape(N, Cin, D * H * W)
    p = dilation * (k - 1) // 2                        # calc_same_padding, stride 1
    xp = jnp.pad(x_ndhwc, ((0, 0), (p, p), (p, p), (p, p), (0, 0)))
    taps = []
    for kd, kh, kw in itertools.product(range(k), repeat=3):
        taps.append(xp[:, kd * dilation:kd * dilation + D,
                          kh * dilation:kh * dilation + H,
                          kw * dilation:kw * dilation + W, :])
    stk = jnp.stack(taps, axis=1)                      # (N, T, D, H, W, Cin)
    stk = jnp.moveaxis(stk, -1, 2)                     # (N, T, Cin, D, H, W)
    return stk.reshape(N, k ** 3 * Cin, D * H * W)     # (N, T*Cin, DHW)


def _make_stem_kernel(num_layers):
    """One grid step = one (batch, voxel-tile, cap): layer-0 tap matmul + ReLU,
    then (num_layers - 1) pointwise matmuls + ReLU, all resident in VMEM."""

    def kernel(*refs):
        x_ref, o_ref = refs[0], refs[-1]
        w_refs = refs[1:-1:2]
        b_refs = refs[2:-1:2]
        # f32 compute end to end (bf16 is only the HBM storage format of the
        # x stream) -> no unsupported bf16 x bf16 dots, f32 MXU accumulation.
        h = x_ref[...].astype(jnp.float32)
        for l in range(num_layers):
            h = jnp.dot(w_refs[l][...], h, preferred_element_type=jnp.float32)
            h = jnp.maximum(h + b_refs[l][...], 0.0)
        o_ref[...] = h.astype(o_ref.dtype)

    return kernel


def stem_block_forward_pallas(x_ncdhw, params, kernel_sizes, dilations,
                              m_tile_max=16384):
    """StemBlock.forward as a single fused pallas_call.

    Returns (N, n_caps, C_out, D, H, W), written directly in that layout.
    """
    N, Cin, D, H, W = x_ncdhw.shape
    n_caps = len(params)
    num_layers = len(params[0])
    DHW = D * H * W

    # --- structural assumptions the fusion relies on (StemBlock defaults) ----
    k_first = [kernel_sizes[c][0] for c in range(n_caps)]
    for c in range(n_caps):
        assert len(params[c]) == num_layers
        for l in range(1, num_layers):
            assert kernel_sizes[c][l] == 1, \
                "fused stem kernel requires 1x1x1 follow-up convs"
    pw_caps = [c for c in range(n_caps) if k_first[c] == 1]
    conv_caps = [c for c in range(n_caps) if k_first[c] > 1]
    n_pw_lead = len(pw_caps)
    assert pw_caps == list(range(n_pw_lead)), \
        "fused stem kernel expects pointwise (k=1) caps to come first"
    if conv_caps:
        k_shared = k_first[conv_caps[0]]
        assert all(k_first[c] == k_shared for c in conv_caps), \
            "conv caps must share a single first-layer kernel size"

    x_ndhwc = jnp.transpose(x_ncdhw, (0, 2, 3, 4, 1))  # (N, D, H, W, Cin)

    # --- layer-0 input stream: im2col per conv cap, stacked over caps --------
    if conv_caps:
        k = k_shared
        TC = k ** 3 * Cin
        TCp = _round_up(TC, 16)                        # bf16 sublane pack
        center = (k // 2) * (k * k) + (k // 2) * k + (k // 2)
        streams = [_im2col(x_ndhwc.astype(jnp.bfloat16), k, dilations[c][0])
                   for c in conv_caps]                 # each (N, TC, DHW)
        x_stream = jnp.stack(streams, axis=0)          # (S, N, TC, DHW) bf16
        if TCp != TC:
            x_stream = jnp.pad(x_stream, ((0, 0), (0, 0), (0, TCp - TC), (0, 0)))
    else:                                              # all caps are pointwise
        TC = TCp = Cin
        center = 0
        x_stream = jnp.moveaxis(x_ndhwc, -1, 1).reshape(1, N, Cin, DHW)
        x_stream = x_stream.astype(jnp.float32)

    # --- lane-dense voxel tiling (tiles never straddle batches) --------------
    DHW_pad = _round_up(DHW, 128)
    m_tile = _pick_m_tile(DHW_pad, m_tile_max)
    if DHW_pad != DHW:
        # TODO(synk): fallback only; defaults (DHW % 128 == 0) avoid both the
        # padded tail and the post-call slice.
        x_stream = jnp.pad(x_stream, ((0, 0), (0, 0), (0, 0), (0, DHW_pad - DHW)))
    num_m = DHW_pad // m_tile

    # --- stacked per-cap weights / biases (tiny, f32) ------------------------
    w_stacked, b_stacked = [], []
    C1 = params[0][0][0].shape[-1]
    w0, b0 = [], []
    for c in range(n_caps):
        w, b = params[c][0]
        assert w.shape[-1] == C1
        wt = jnp.zeros((TCp, C1), jnp.float32)
        if k_first[c] == 1:
            # pointwise cap: weights live at the centre-tap rows of the shared
            # im2col stream.
            wt = wt.at[center * Cin:(center + 1) * Cin, :].set(
                w.reshape(Cin, C1).astype(jnp.float32))
        else:
            wt = wt.at[:k_first[c] ** 3 * Cin, :].set(
                w.reshape(-1, C1).astype(jnp.float32))
        w0.append(wt.T)                                # (C1, TCp)
        b0.append(b.reshape(C1, 1).astype(jnp.float32))
    w_stacked.append(jnp.stack(w0, axis=0))            # (n_caps, C1, TCp)
    b_stacked.append(jnp.stack(b0, axis=0))            # (n_caps, C1, 1)
    c_prev = C1
    for l in range(1, num_layers):
        co = params[0][l][0].shape[-1]
        wl, bl = [], []
        for c in range(n_caps):
            w, b = params[c][l]
            assert w.shape[-2] == c_prev and w.shape[-1] == co
            wl.append(w.reshape(c_prev, co).T.astype(jnp.float32))  # (co, c_prev)
            bl.append(b.reshape(co, 1).astype(jnp.float32))
        w_stacked.append(jnp.stack(wl, axis=0))        # (n_caps, co, c_prev)
        b_stacked.append(jnp.stack(bl, axis=0))        # (n_caps, co, 1)
        c_prev = co
    C_out = c_prev

    # --- grid / specs ---------------------------------------------------------
    # caps on the fastest axis so the pointwise cap's reuse of the first conv
    # stream never re-fetches the x block.
    grid = (N, num_m, n_caps)

    if conv_caps:
        def x_index_map(n, i, c):
            return (jnp.maximum(c - n_pw_lead, 0), n, 0, i)
    else:
        def x_index_map(n, i, c):
            return (0, n, 0, i)

    in_specs = [pl.BlockSpec((None, None, TCp, m_tile), x_index_map)]
    inputs = [x_stream]
    for l in range(num_layers):
        in_specs.append(pl.BlockSpec((None,) + w_stacked[l].shape[1:],
                                     lambda n, i, c: (c, 0, 0)))
        in_specs.append(pl.BlockSpec((None,) + b_stacked[l].shape[1:],
                                     lambda n, i, c: (c, 0, 0)))
        inputs += [w_stacked[l], b_stacked[l]]

    out_specs = pl.BlockSpec((None, None, C_out, m_tile),
                             lambda n, i, c: (n, c, 0, i))
    out_shape = jax.ShapeDtypeStruct((N, n_caps, C_out, DHW_pad), jnp.float32)

    # --- advisory cost estimate ----------------------------------------------
    flops_per_vox = 2 * TCp * C1
    ci = C1
    for l in range(1, num_layers):
        co = w_stacked[l].shape[1]
        flops_per_vox += 2 * ci * co
        ci = co
    flops = n_caps * N * DHW_pad * flops_per_vox
    bytes_accessed = (
        x_stream.size * x_stream.dtype.itemsize
        + sum(w.size * 4 + b.size * 4 for w, b in zip(w_stacked, b_stacked))
        + N * n_caps * C_out * DHW_pad * 4)

    out = pl.pallas_call(
        _make_stem_kernel(num_layers),
        out_shape=out_shape,
        grid=grid,
        in_specs=in_specs,
        out_specs=out_specs,
        compiler_params=pltpu.CompilerParams(
            dimension_semantics=("parallel", "parallel", "arbitrary"),
            vmem_limit_bytes=32 * 1024 * 1024),
        cost_estimate=pl.CostEstimate(flops=flops, transcendentals=0,
                                      bytes_accessed=bytes_accessed),
    )(*inputs)

    if DHW_pad != DHW:
        out = out[..., :DHW]
    return out.reshape(N, n_caps, C_out, D, H, W)


def stem_block_forward_ref(x_ncdhw, params, kernel_sizes, dilations):
    """Pure-JAX reference (per-layer dilated conv + bias + ReLU, then stack)."""
    x_ndhwc = jnp.transpose(x_ncdhw, (0, 2, 3, 4, 1))
    caps = []
    for c, cap_params in enumerate(params):
        h = x_ndhwc
        for l, (w, b) in enumerate(cap_params):
            k = kernel_sizes[c][l]
            dil = dilations[c][l]
            p = dil * (k - 1) // 2
            h = jax.lax.conv_general_dilated(
                h, w, window_strides=(1, 1, 1), padding=[(p, p)] * 3,
                rhs_dilation=(dil,) * 3,
                dimension_numbers=('NDHWC', 'DHWIO', 'NDHWC'))
            h = jnp.maximum(h + b, 0.0)
        caps.append(jnp.transpose(h, (0, 4, 1, 2, 3)))
    return jnp.stack(caps, axis=1)


if __name__ == "__main__":
    key = jax.random.PRNGKey(0)

    # Small shapes consistent with StemBlock defaults (n_caps=4, stem_size=3, in_channels=1).
    N, Cin, D, H, W = 2, 1, 8, 8, 8
    n_caps, stem_size = 4, 3
    stem_channels = [16, 16, 16]
    stem_kernel_sizes = [[1, 1, 1], [3, 1, 1], [3, 1, 1], [3, 1, 1]]
    stem_dilations = [[1, 1, 1], [6, 1, 1], [12, 1, 1], [18, 1, 1]]

    x = jax.random.normal(key, (N, Cin, D, H, W), dtype=jnp.float32)

    # Deterministic synthetic parameters (shapes from the module's __init__).
    params = []
    in_ch = [Cin] + stem_channels[:-1]
    for c in range(n_caps):
        cap = []
        for l in range(stem_size):
            k = stem_kernel_sizes[c][l]
            ci, co = in_ch[l], stem_channels[l]
            wkey = jax.random.fold_in(key, 1000 + c * 100 + l * 10 + 1)
            bkey = jax.random.fold_in(key, 1000 + c * 100 + l * 10 + 2)
            fan_in = ci * k ** 3
            w = jax.random.normal(wkey, (k, k, k, ci, co), jnp.float32) / jnp.sqrt(
                jnp.float32(fan_in))
            b = 0.1 * jax.random.normal(bkey, (co,), jnp.float32)
            cap.append((w, b))
        params.append(cap)

    fwd = jax.jit(lambda xx, pp: stem_block_forward_pallas(
        xx, pp, stem_kernel_sizes, stem_dilations))
    out = jax.block_until_ready(fwd(x, params))
    assert out.shape == (N, n_caps, stem_channels[-1], D, H, W), out.shape

    # Cross-check vs a pure-JAX dilated-conv reference. The x stream is stored
    # in bf16 (f32 compute), hence the slightly loosened tolerance.
    ref = jax.block_until_ready(
        stem_block_forward_ref(x, params, stem_kernel_sizes, stem_dilations))
    max_err = float(jnp.max(jnp.abs(out - ref)))
    assert jnp.allclose(out, ref, atol=2e-2, rtol=2e-2), max_err

    print("KERNEL_OK")
</pallas_src>

<mosaic_0001>
module attributes {stable_mosaic.version = 11 : i64} {
  func.func @kernel(%arg0: i32, %arg1: i32, %arg2: i32, %arg3: memref<1x1x32x512xbf16, #tpu.memory_space<vmem>>, %arg4: memref<1x16x32xf32, #tpu.memory_space<vmem>>, %arg5: memref<1x16x1xf32, #tpu.memory_space<vmem>>, %arg6: memref<1x16x16xf32, #tpu.memory_space<vmem>>, %arg7: memref<1x16x1xf32, #tpu.memory_space<vmem>>, %arg8: memref<1x16x16xf32, #tpu.memory_space<vmem>>, %arg9: memref<1x16x1xf32, #tpu.memory_space<vmem>>, %arg10: memref<1x1x16x512xf32, #tpu.memory_space<vmem>>) attributes {dimension_semantics = [#tpu.dimension_semantics<parallel>, #tpu.dimension_semantics<parallel>, #tpu.dimension_semantics<arbitrary>], iteration_bounds = array<i64: 2, 1, 4>, scalar_prefetch = 0 : i64, scratch_operands = 0 : i64, tpu.core_type = #tpu.core_type<tc>, window_params = [{transform_indices = @transform_0, window_bounds = array<i64: 1, 1, 32, 512>}, {transform_indices = @transform_1, window_bounds = array<i64: 1, 16, 32>}, {transform_indices = @transform_2, window_bounds = array<i64: 1, 16, 1>}, {transform_indices = @transform_3, window_bounds = array<i64: 1, 16, 16>}, {transform_indices = @transform_4, window_bounds = array<i64: 1, 16, 1>}, {transform_indices = @transform_5, window_bounds = array<i64: 1, 16, 16>}, {transform_indices = @transform_6, window_bounds = array<i64: 1, 16, 1>}, {transform_indices = @transform_7, window_bounds = array<i64: 1, 1, 16, 512>}]} {
    %c0 = arith.constant 0 : index
    %c0_0 = arith.constant 0 : index
    %c0_1 = arith.constant 0 : index
    %c0_2 = arith.constant 0 : index
    %0 = vector.load %arg3[%c0, %c0_0, %c0_1, %c0_2] : memref<1x1x32x512xbf16, #tpu.memory_space<vmem>>, vector<1x1x32x512xbf16>
    %1 = vector.shape_cast %0 : vector<1x1x32x512xbf16> to vector<32x512xbf16>
    %2 = arith.extf %1 : vector<32x512xbf16> to vector<32x512xf32>
    %c0_3 = arith.constant 0 : index
    %c0_4 = arith.constant 0 : index
    %c0_5 = arith.constant 0 : index
    %3 = vector.load %arg4[%c0_3, %c0_4, %c0_5] : memref<1x16x32xf32, #tpu.memory_space<vmem>>, vector<1x16x32xf32>
    %4 = vector.shape_cast %3 : vector<1x16x32xf32> to vector<16x32xf32>
    %cst = arith.constant dense<0.000000e+00> : vector<16x512xf32>
    %5 = tpu.matmul %4, %2, %cst {dimension_numbers = #tpu.dot_dimension_numbers<[1], [0], [0], [1], [0, 0, 1, 1], [], []>} : vector<16x32xf32>, vector<32x512xf32>, vector<16x512xf32> -> vector<16x512xf32>
    %c0_6 = arith.constant 0 : index
    %c0_7 = arith.constant 0 : index
    %c0_8 = arith.constant 0 : index
    %6 = vector.load %arg5[%c0_6, %c0_7, %c0_8] : memref<1x16x1xf32, #tpu.memory_space<vmem>>, vector<1x16x1xf32>
    %7 = vector.shape_cast %6 : vector<1x16x1xf32> to vector<16x1xf32>
    %8 = vector.broadcast %7 : vector<16x1xf32> to vector<16x512xf32>
    %9 = arith.addf %5, %8 : vector<16x512xf32>
    %cst_9 = arith.constant 0.000000e+00 : f32
    %10 = vector.broadcast %cst_9 : f32 to vector<16x512xf32>
    %11 = arith.maximumf %9, %10 : vector<16x512xf32>
    %c0_10 = arith.constant 0 : index
    %c0_11 = arith.constant 0 : index
    %c0_12 = arith.constant 0 : index
    %12 = vector.load %arg6[%c0_10, %c0_11, %c0_12] : memref<1x16x16xf32, #tpu.memory_space<vmem>>, vector<1x16x16xf32>
    %13 = vector.shape_cast %12 : vector<1x16x16xf32> to vector<16x16xf32>
    %cst_13 = arith.constant dense<0.000000e+00> : vector<16x512xf32>
    %14 = tpu.matmul %13, %11, %cst_13 {dimension_numbers = #tpu.dot_dimension_numbers<[1], [0], [0], [1], [0, 0, 1, 1], [], []>} : vector<16x16xf32>, vector<16x512xf32>, vector<16x512xf32> -> vector<16x512xf32>
    %c0_14 = arith.constant 0 : index
    %c0_15 = arith.constant 0 : index
    %c0_16 = arith.constant 0 : index
    %15 = vector.load %arg7[%c0_14, %c0_15, %c0_16] : memref<1x16x1xf32, #tpu.memory_space<vmem>>, vector<1x16x1xf32>
    %16 = vector.shape_cast %15 : vector<1x16x1xf32> to vector<16x1xf32>
    %17 = vector.broadcast %16 : vector<16x1xf32> to vector<16x512xf32>
    %18 = arith.addf %14, %17 : vector<16x512xf32>
    %cst_17 = arith.constant 0.000000e+00 : f32
    %19 = vector.broadcast %cst_17 : f32 to vector<16x512xf32>
    %20 = arith.maximumf %18, %19 : vector<16x512xf32>
    %c0_18 = arith.constant 0 : index
    %c0_19 = arith.constant 0 : index
    %c0_20 = arith.constant 0 : index
    %21 = vector.load %arg8[%c0_18, %c0_19, %c0_20] : memref<1x16x16xf32, #tpu.memory_space<vmem>>, vector<1x16x16xf32>
    %22 = vector.shape_cast %21 : vector<1x16x16xf32> to vector<16x16xf32>
    %cst_21 = arith.constant dense<0.000000e+00> : vector<16x512xf32>
    %23 = tpu.matmul %22, %20, %cst_21 {dimension_numbers = #tpu.dot_dimension_numbers<[1], [0], [0], [1], [0, 0, 1, 1], [], []>} : vector<16x16xf32>, vector<16x512xf32>, vector<16x512xf32> -> vector<16x512xf32>
    %c0_22 = arith.constant 0 : index
    %c0_23 = arith.constant 0 : index
    %c0_24 = arith.constant 0 : index
    %24 = vector.load %arg9[%c0_22, %c0_23, %c0_24] : memref<1x16x1xf32, #tpu.memory_space<vmem>>, vector<1x16x1xf32>
    %25 = vector.shape_cast %24 : vector<1x16x1xf32> to vector<16x1xf32>
    %26 = vector.broadcast %25 : vector<16x1xf32> to vector<16x512xf32>
    %27 = arith.addf %23, %26 : vector<16x512xf32>
    %cst_25 = arith.constant 0.000000e+00 : f32
    %28 = vector.broadcast %cst_25 : f32 to vector<16x512xf32>
    %29 = arith.maximumf %27, %28 : vector<16x512xf32>
    %c0_26 = arith.constant 0 : index
    %c0_27 = arith.constant 0 : index
    %c0_28 = arith.constant 0 : index
    %c0_29 = arith.constant 0 : index
    %30 = vector.load %arg10[%c0_26, %c0_27, %c0_28, %c0_29] : memref<1x1x16x512xf32, #tpu.memory_space<vmem>>, vector<1x1x16x512xf32>
    %31 = vector.shape_cast %30 : vector<1x1x16x512xf32> to vector<16x512xf32>
    %32 = vector.shape_cast %29 : vector<16x512xf32> to vector<1x1x16x512xf32>
    tpu.vector_store %arg10[%c0_26, %c0_27, %c0_28, %c0_29], %32 {strides = array<i32>} : memref<1x1x16x512xf32, #tpu.memory_space<vmem>>, vector<1x1x16x512xf32>,
    return
  }
  func.func @transform_0(%arg0: i32, %arg1: i32, %arg2: i32) -> (i32, i32, i32, i32) {
    %c1_i32 = arith.constant 1 : i32
    %0 = arith.subi %arg2, %c1_i32 : i32
    %c0_i32 = arith.constant 0 : i32
    %1 = arith.maxsi %0, %c0_i32 : i32
    %c0_i32_0 = arith.constant 0 : i32
    %c0_i32_1 = arith.constant 0 : i32
    return %1, %arg0, %c0_i32_0, %arg1 : i32, i32, i32, i32
  }
  func.func @transform_1(%arg0: i32, %arg1: i32, %arg2: i32) -> (i32, i32, i32) {
    %c0_i32 = arith.constant 0 : i32
    %c0_i32_0 = arith.constant 0 : i32
    %c0_i32_1 = arith.constant 0 : i32
    return %arg2, %c0_i32, %c0_i32_0 : i32, i32, i32
  }
  func.func @transform_2(%arg0: i32, %arg1: i32, %arg2: i32) -> (i32, i32, i32) {
    %c0_i32 = arith.constant 0 : i32
    %c0_i32_0 = arith.constant 0 : i32
    %c0_i32_1 = arith.constant 0 : i32
    return %arg2, %c0_i32, %c0_i32_0 : i32, i32, i32
  }
  func.func @transform_3(%arg0: i32, %arg1: i32, %arg2: i32) -> (i32, i32, i32) {
    %c0_i32 = arith.constant 0 : i32
    %c0_i32_0 = arith.constant 0 : i32
    %c0_i32_1 = arith.constant 0 : i32
    return %arg2, %c0_i32, %c0_i32_0 : i32, i32, i32
  }
  func.func @transform_4(%arg0: i32, %arg1: i32, %arg2: i32) -> (i32, i32, i32) {
    %c0_i32 = arith.constant 0 : i32
    %c0_i32_0 = arith.constant 0 : i32
    %c0_i32_1 = arith.constant 0 : i32
    return %arg2, %c0_i32, %c0_i32_0 : i32, i32, i32
  }
  func.func @transform_5(%arg0: i32, %arg1: i32, %arg2: i32) -> (i32, i32, i32) {
    %c0_i32 = arith.constant 0 : i32
    %c0_i32_0 = arith.constant 0 : i32
    %c0_i32_1 = arith.constant 0 : i32
    return %arg2, %c0_i32, %c0_i32_0 : i32, i32, i32
  }
  func.func @transform_6(%arg0: i32, %arg1: i32, %arg2: i32) -> (i32, i32, i32) {
    %c0_i32 = arith.constant 0 : i32
    %c0_i32_0 = arith.constant 0 : i32
    %c0_i32_1 = arith.constant 0 : i32
    return %arg2, %c0_i32, %c0_i32_0 : i32, i32, i32
  }
  func.func @transform_7(%arg0: i32, %arg1: i32, %arg2: i32) -> (i32, i32, i32, i32) {
    %c0_i32 = arith.constant 0 : i32
    %c0_i32_0 = arith.constant 0 : i32
    return %arg0, %arg2, %c0_i32, %arg1 : i32, i32, i32, i32
  }
}

</mosaic_0001>

<bundles_post_ra>
// kernel: _lambda_.1
= control target key start
LH: loop header
LB: loop body
LE: loop exit
PB: predicated region body
PF: predicated region fallthrough
CT: control target
= control target key end

     0   :  { %s1488_s24 = smov 0   ;;  %s1490_s25 = smov 0   ;;  %s1593_s0 = inlined_call_operand.vmem [shape: bf16[3,2,32,512], index: 0, kind: input, shape index: {}]   ;;  %s1594_s1 = inlined_call_operand.vmem [shape: f32[4,16,32], index: 1, kind: input, shape index: {}]   ;;  %s1595_s2 = inlined_call_operand.vmem [shape: f32[4,16,1], index: 2, kind: input, shape index: {}]   ;;  %s1596_s3 = inlined_call_operand.vmem [shape: f32[4,16,16], index: 3, kind: input, shape index: {}]   ;;  %s1597_s4 = inlined_call_operand.vmem [shape: f32[4,16,1], index: 4, kind: input, shape index: {}]   ;;  %s1598_s5 = inlined_call_operand.vmem [shape: f32[4,16,16], index: 5, kind: input, shape index: {}]   ;;  %s1599_s6 = inlined_call_operand.vmem [shape: f32[4,16,1], index: 6, kind: input, shape index: {}]   ;;  %s1600_s7 = inlined_call_operand.vmem [shape: f32[2,4,16,512], index: 7, kind: output, shape index: {}]  }
   0x1   :  { %s1492_s26 = smov 0   ;;  %s1494_s27 = smov 0  }
   0x2   :  { %s1496_s28 = smov 0  }
   0x3 LB: > { %s29_s29 = sadd.s32 1, %s1436_s26  ;;  %s36_s30 = sadd.s32 1, %s1440_s27  ;;  %s1444_s28 = sphi %s1496_s28, %s17_s28   ;;  %s1440_s27 = sphi %s1494_s27, %s1604_s27   ;;  %s1436_s26 = sphi %s1492_s26, %s1603_s26   ;;  %s1432_s25 = sphi %s1490_s25, %s1602_s25   ;;  %s1428_s24 = sphi %s1488_s24, %s1601_s24  }
   0x4   : > { %p30_p0 = scmp.ge.s32.totalorder %s29_s29, 4  ;;  %p1263_p1 = scmp.ge.s32.totalorder %s1444_s28, 1 }
   0x5   : > { %p345_p2 = scmp.lt.s32.totalorder %s1444_s28, 9 }
   0x6   : > { %s1606_s29 = smov (%p30_p0, %s29_s29), 0  ;;  %s1608_s30 = smov (!%p30_p0, %s36_s30), %s1440_s27 }
   0x7   : > { %p346_p3 = pnand %p1263_p1, %p345_p2  ;;  %p38_p4 = scmp.ge.s32.totalorder %s1608_s30, 2 }
   0x8   : > { %s1264_s8 = sadd.s32 (!%p346_p3), 4294967295, %s1428_s24  ;;  %p432_p5 = scmp.lt.s32.totalorder (!%p346_p3), %s1432_s25, 1  ;;  %v1446_v0 = vmov (!%p346_p3), 0.0   ;;  %v1447_v1 = vmov (!%p346_p3), 0   ;;  %vm528_vm0 = vcmask (!%p346_p3), 261120   ;;  %vm711_vm1 = vcmask (!%p346_p3), 130048  }
   0x9   : > { %s1610_s30 = smov (%p38_p4, %s1608_s30), 0  ;;  %349 = sbr.rel (%p346_p3) target bundleno = 707 (0x2c3), region = 48 }
   0xa   : > { %p427_p6 = scmp.gt.s32.totalorder (!%p346_p3), %s1264_s8, 0  ;;  %p1265_p7 = scmp.lt.s32.totalorder (!%p346_p3), %s1264_s8, 2  ;;  %599 = vmatprep.mubr.f32.mxu0 (!%p346_p3), %v1446_v0  ;;  %676 = vmatprep.mubr.f32.mxu1 (!%p346_p3), %v1446_v0 }
   0xb   : > { %1392 = vset.pattern.permute.xlu0 (!%p346_p3), %v1447_v1  ;;  %1393 = vset.pattern.permute.xlu1 (!%p346_p3), %v1447_v1  ;;  %p446_p8 = scmp.lt.s32.totalorder (!%p346_p3), %s1428_s24, 3 }
  0x10   : > { %s1612_s25 = smov (!%p432_p5, %s1432_s25), 1  ;;  %s1614_s8 = smov (!%p427_p6, %s1264_s8), 0 }
  0x11   : > { %s1270_s9 = sshll.u32 %s1612_s25, 4  ;;  %s1616_s8 = smov (!%p1265_p7, %s1614_s8), 2 }
  0x12   : > { %s1618_s24 = smov (!%p446_p8, %s1428_s24), 3  ;;  %s1271_s10 = sshll.u32 %s1616_s8, 5 }
  0x13   : > { %s439_s11 = sadd.s32 %s1271_s10, %s1270_s9  ;;  %s1286_s12 = sshll.u32 %s1612_s25, 5 }
  0x14   : > { %s1272_s13 = sshll.u32 %s439_s11, 2  ;;  %s1285_s17 = sshll.u32 %s1618_s24, 3 }
  0x15   : > { %s441_s16 = scalar_lea.vmem %s1593_s0, %s1272_s13  ;;  %s1528_s18 = sadd.s32 %s1286_s12, %s1285_s17 }
  0x16   : > { %v1394_v2 = vld [vmem:[%s441_s16 + $0x4] ss:$16 sps:$4 sm:$0xff]   ;;  %v1396_v3 = vld [vmem:[%s441_s16 + $0xc] ss:$16 sps:$4 sm:$0xff]   ;;  %s1530_s19 = sshll.u32 %s1618_s24, 4 }
  0x17   : > { %1311 = vmatprep.subr.bf16.mxu0 %v1394_v2  ;;  %v1398_v4 = vld [vmem:[%s441_s16] ss:$16 sps:$4 sm:$0xff]   ;;  %v1399_v5 = vld [vmem:[%s441_s16 + $0x8] ss:$16 sps:$4 sm:$0xff]   ;;  %s455_s22 = scalar_lea.vmem %s1595_s2, %s1530_s19  ;;  %1319 = vmatprep.subr.bf16.mxu1 %v1396_v3  ;;  %v1400_v6 = vld [vmem:[%s441_s16 + $0x24] ss:$16 sps:$4 sm:$0xff]   ;;  %s450_s25 = scalar_lea.vmem %s1594_s1, %s1530_s19 }
  0x18   : > { %1313 = vmatpush1.bf16.msra.mxu0 %v1398_v4  ;;  %1321 = vmatpush1.bf16.msra.mxu1 %v1399_v5  ;;  %v1402_v7 = vld [vmem:[%s441_s16 + $0x2c] ss:$16 sps:$4 sm:$0xff]   ;;  %v1404_v8 = vld [vmem:[%s441_s16 + $0x20] ss:$16 sps:$4 sm:$0xff]   ;;  %v1405_v9 = vld [vmem:[%s441_s16 + $0x28] ss:$16 sps:$4 sm:$0xff]   ;;  %s475_s10 = scalar_lea.vmem %s1599_s6, %s1530_s19  ;;  %s465_s13 = scalar_lea.vmem %s1597_s4, %s1530_s19 }
  0x19   : > { %1315 = vmatprep.subr.bf16.mxu0 %v1400_v6  ;;  %v516_v10 = vld [vmem:[%s455_s22] sm:$0xff]  ;;  %1323 = vmatprep.subr.bf16.mxu1 %v1402_v7  ;;  %v517_v11 = vld [vmem:[%s455_s22 + $0x8] sm:$0xff]  ;;  %s460_s16 = scalar_lea.vmem %s1596_s3, %s1530_s19  ;;  %s470_s21 = scalar_lea.vmem %s1598_s5, %s1530_s19 }
  0x1a   : > { %520 = vperm.xlu0 %1392, %v516_v10   ;;  %v514_v12 = vld [vmem:[%s450_s25] sm:$0xff]  ;;  %v515_v14 = vld [vmem:[%s450_s25 + $0x8] sm:$0xff]  ;;  %s1287_s22 = sshll.u32 %s1528_s18, 3 }
  0x1b   : > { %v882_v13 = vld [vmem:[%s475_s10] sm:$0xff]  ;;  %v700_v16 = vld [vmem:[%s465_s13 + $0x8] sm:$0xff]  ;;  %s488_s24 = scalar_lea.vmem %s1600_s7, %s1287_s22 }
  0x1c   : > { %1317 = vmatpush1.bf16.msra.mxu0 %v1404_v8  ;;  %1325 = vmatpush1.bf16.msra.mxu1 %v1405_v9  ;;  %v699_v15 = vld [vmem:[%s465_s13] sm:$0xff]  ;;  %v883_v17 = vld [vmem:[%s475_s10 + $0x8] sm:$0xff] }
  0x1d   : > { %703 = vperm.xlu1 %1393, %v699_v15   ;;  %v697_v48 = vld [vmem:[%s460_s16] sm:$0xff]  ;;  %v698_v49 = vld [vmem:[%s460_s16 + $0x8] sm:$0xff] }
  0x1e   : > { %525 = vperm.xlu0 %1392, %v517_v11  }
  0x1f   : > { %1288 = vmatmul.mubr.msk.f32.vlgmr.msra.gmra.mrb[0].mxu0 %vm528_vm0, %v514_v12  ;;  %1290 = vmatmul.mubr.msk.f32.vlgmr.msra.gmra.mrb[0].mxu1 %vm528_vm0, %v514_v12 }
  0x20   : > { %605 = vmatprep.mubr.f32.mxu0 %v1446_v0  ;;  %682 = vmatprep.mubr.f32.mxu1 %v1446_v0 }
  0x21   : > { %708 = vperm.xlu1 %1393, %v700_v16  }
  0x22   : > { %886 = vperm.xlu0 %1392, %v882_v13  }
  0x23   : > { %1289 = vmatmul.mubr.msk.f32.gmra.mrb[2].mxu0 %vm528_vm0, %v515_v14  ;;  %1291 = vmatmul.mubr.msk.f32.gmra.mrb[2].mxu1 %vm528_vm0, %v515_v14 }
  0x24   : > { %782 = vmatprep.mubr.f32.mxu0 %v1446_v0  ;;  %859 = vmatprep.mubr.f32.mxu1 %v1446_v0 }
  0x25   : > { %891 = vperm.xlu1 %1393, %v883_v17   ;;  %v880_v17 = vld [vmem:[%s470_s21] sm:$0xff] }
  0x99   : > { %v521_v18 = vpop.permute.xlu0 %520 }
  0x9c   : > { %v704_v50 = vpop.permute.xlu1 %703 }
  0x9d   : > { %v526_v23 = vpop.permute.xlu0 %525 }
  0xa0   : > { %v709_v55 = vpop.permute.xlu1 %708 }
  0xf2   : > { %v601_v19 = vpop.f32.mrb[0].mxu0  ;;  %v678_v20 = vpop.f32.mrb[0].mxu1 }
  0xf3   : > { %v603_v21 = vpop.f32.mrb[1].mxu0  ;;  %v680_v22 = vpop.f32.mrb[1].mxu1  ;;  %v602_v24 = vadd.f32 %v601_v19, %v521_v18  ;;  %v679_v25 = vadd.f32 %v678_v20, %v521_v18 }
  0xf4   : > { %v604_v26 = vadd.f32 %v603_v21, %v521_v18  ;;  %v681_v27 = vadd.f32 %v680_v22, %v521_v18  ;;  %v881_v18 = vld [vmem:[%s470_s21 + $0x8] sm:$0xff]  ;;  %v887_v19 = vpop.permute.xlu0 %886 }
  0xf5   : > { %v689_v36 = vmax.f32 %v602_v24, 0.0  ;;  %v691_v37 = vmax.f32 %v679_v25, 0.0 }
  0xf6   : > { %v607_v28 = vpop.f32.mrb[2].mxu0  ;;  %v684_v29 = vpop.f32.mrb[2].mxu1  ;;  %v690_v40 = vmax.f32 %v604_v26, 0.0  ;;  %v692_v41 = vmax.f32 %v681_v27, 0.0 }
  0xf7   : > { %v608_v30 = vadd.f32 %v607_v28, %v526_v23  ;;  %v685_v31 = vadd.f32 %v684_v29, %v526_v23  ;;  %v609_v32 = vpop.f32.mrb[3].mxu0  ;;  %v686_v33 = vpop.f32.mrb[3].mxu1 }
  0xf8   : > { %v610_v34 = vadd.f32 %v609_v32, %v526_v23  ;;  %v687_v35 = vadd.f32 %v686_v33, %v526_v23 }
  0xf9   : > { %v693_v38 = vmax.f32 %v608_v30, 0.0  ;;  %v695_v39 = vmax.f32 %v685_v31, 0.0 }
  0xfa   : > { %v694_v42 = vmax.f32 %v610_v34, 0.0  ;;  %v696_v43 = vmax.f32 %v687_v35, 0.0 }
  0xfb   : > { %v1328_v44 = vpack.c.bf16 %v693_v38, %v689_v36  ;;  %v1332_v45 = vpack.c.bf16 %v695_v39, %v691_v37 }
  0xfc   : > { %v1326_v46 = vpack.c.bf16 %v694_v42, %v690_v40  ;;  %v1330_v47 = vpack.c.bf16 %v696_v43, %v692_v41 }
  0xfe   : > { %1327 = vmatprep.subr.bf16.mxu0 %v1326_v46  ;;  %1331 = vmatprep.subr.bf16.mxu1 %v1330_v47 }
  0xff   : > { %1329 = vmatpush1.bf16.msra.mxu0 %v1328_v44  ;;  %1333 = vmatpush1.bf16.msra.mxu1 %v1332_v45 }
 0x102   : > { %1292 = vmatmul.mubr.msk.f32.vlgmr.msra.gmra.mrb[4].mxu0 %vm711_vm1, %v697_v48  ;;  %1294 = vmatmul.mubr.msk.f32.vlgmr.msra.gmra.mrb[4].mxu1 %vm711_vm1, %v697_v48 }
 0x103   : > { %788 = vmatprep.mubr.f32.mxu0 %v1446_v0  ;;  %865 = vmatprep.mubr.f32.mxu1 %v1446_v0 }
 0x106   : > { %1293 = vmatmul.mubr.msk.f32.gmra.mrb[6].mxu0 %vm711_vm1, %v698_v49  ;;  %1295 = vmatmul.mubr.msk.f32.gmra.mrb[6].mxu1 %vm711_vm1, %v698_v49 }
 0x107   : > { %964 = vmatprep.mubr.f32.mxu0 %v1446_v0  ;;  %1041 = vmatprep.mubr.f32.mxu1 %v1446_v0 }
 0x1d5   : > { %v784_v51 = vpop.f32.mrb[4].mxu0  ;;  %v861_v52 = vpop.f32.mrb[4].mxu1 }
 0x1d6   : > { %v786_v53 = vpop.f32.mrb[5].mxu0  ;;  %v863_v54 = vpop.f32.mrb[5].mxu1  ;;  %v785_v56 = vadd.f32 %v784_v51, %v704_v50  ;;  %v862_v57 = vadd.f32 %v861_v52, %v704_v50 }
 0x1d7   : > { %v787_v58 = vadd.f32 %v786_v53, %v704_v50  ;;  %v864_v59 = vadd.f32 %v863_v54, %v704_v50 }
 0x1d8   : > { %v872_v5 = vmax.f32 %v785_v56, 0.0  ;;  %v874_v6 = vmax.f32 %v862_v57, 0.0 }
 0x1d9   : > { %v790_v60 = vpop.f32.mrb[6].mxu0  ;;  %v867_v61 = vpop.f32.mrb[6].mxu1  ;;  %v873_v9 = vmax.f32 %v787_v58, 0.0  ;;  %v875_v10 = vmax.f32 %v864_v59, 0.0 }
 0x1da   : > { %v791_v62 = vadd.f32 %v790_v60, %v709_v55  ;;  %v868_v63 = vadd.f32 %v867_v61, %v709_v55  ;;  %v792_v1 = vpop.f32.mrb[7].mxu0  ;;  %v869_v2 = vpop.f32.mrb[7].mxu1 }
 0x1db   : > { %v793_v3 = vadd.f32 %v792_v1, %v709_v55  ;;  %v870_v4 = vadd.f32 %v869_v2, %v709_v55 }
 0x1dc   : > { %v876_v7 = vmax.f32 %v791_v62, 0.0  ;;  %v878_v8 = vmax.f32 %v868_v63, 0.0 }
 0x1dd   : > { %v877_v11 = vmax.f32 %v793_v3, 0.0  ;;  %v879_v12 = vmax.f32 %v870_v4, 0.0 }
 0x1de   : > { %v1336_v13 = vpack.c.bf16 %v876_v7, %v872_v5  ;;  %v1340_v14 = vpack.c.bf16 %v878_v8, %v874_v6 }
 0x1df   : > { %v1334_v15 = vpack.c.bf16 %v877_v11, %v873_v9  ;;  %v1338_v16 = vpack.c.bf16 %v879_v12, %v875_v10 }
 0x1e1   : > { %1335 = vmatprep.subr.bf16.mxu0 %v1334_v15  ;;  %1339 = vmatprep.subr.bf16.mxu1 %v1338_v16 }
 0x1e2   : > { %1337 = vmatpush1.bf16.msra.mxu0 %v1336_v13  ;;  %1341 = vmatpush1.bf16.msra.mxu1 %v1340_v14 }
 0x1e5   : > { %1296 = vmatmul.mubr.msk.f32.vlgmr.msra.gmra.mrb[8].mxu0 %vm711_vm1, %v880_v17  ;;  %1298 = vmatmul.mubr.msk.f32.vlgmr.msra.gmra.mrb[8].mxu1 %vm711_vm1, %v880_v17 }
 0x1e6   : > { %970 = vmatprep.mubr.f32.mxu0 %v1446_v0  ;;  %1047 = vmatprep.mubr.f32.mxu1 %v1446_v0  ;;  %v892_v0 = vpop.permute.xlu1 %891 }
 0x1e9   : > { %1297 = vmatmul.mubr.msk.f32.gmra.mrb[10].mxu0 %vm711_vm1, %v881_v18  ;;  %1299 = vmatmul.mubr.msk.f32.gmra.mrb[10].mxu1 %vm711_vm1, %v881_v18 }
 0x2b8   : > { %v966_v20 = vpop.f32.mrb[8].mxu0  ;;  %v1043_v21 = vpop.f32.mrb[8].mxu1 }
 0x2b9   : > { %v967_v22 = vadd.f32 %v966_v20, %v887_v19  ;;  %v1044_v23 = vadd.f32 %v1043_v21, %v887_v19  ;;  %v968_v24 = vpop.f32.mrb[9].mxu0  ;;  %v1045_v25 = vpop.f32.mrb[9].mxu1 }
 0x2ba   : > { %v969_v26 = vadd.f32 %v968_v24, %v887_v19  ;;  %v1046_v27 = vadd.f32 %v1045_v25, %v887_v19 }
 0x2bb   : > { %v1054_v28 = vmax.f32 %v967_v22, 0.0  ;;  %v1056_v29 = vmax.f32 %v1044_v23, 0.0 }
 0x2bc   : > { %v1055_v30 = vmax.f32 %v969_v26, 0.0  ;;  %v1057_v31 = vmax.f32 %v1046_v27, 0.0  ;;  %v972_v32 = vpop.f32.mrb[10].mxu0  ;;  %v1049_v33 = vpop.f32.mrb[10].mxu1 }
 0x2bd   : > { %1062 = vst [vmem:[%s488_s24] sm:$0xff] %v1054_v28  ;;  %1064 = vst [vmem:[%s488_s24 + $0x10] sm:$0xff] %v1056_v29  ;;  %v973_v34 = vadd.f32 %v972_v32, %v892_v0  ;;  %v1050_v35 = vadd.f32 %v1049_v33, %v892_v0  ;;  %v974_v36 = vpop.f32.mrb[11].mxu0  ;;  %v1051_v37 = vpop.f32.mrb[11].mxu1 }
 0x2be   : > { %1063 = vst [vmem:[%s488_s24 + $0x8] sm:$0xff] %v1055_v30  ;;  %1065 = vst [vmem:[%s488_s24 + $0x18] sm:$0xff] %v1057_v31  ;;  %v975_v38 = vadd.f32 %v974_v36, %v892_v0  ;;  %v1052_v39 = vadd.f32 %v1051_v37, %v892_v0 }
 0x2bf   : > { %v1058_v40 = vmax.f32 %v973_v34, 0.0  ;;  %v1060_v41 = vmax.f32 %v1050_v35, 0.0 }
 0x2c0   : > { %v1059_v42 = vmax.f32 %v975_v38, 0.0  ;;  %v1061_v43 = vmax.f32 %v1052_v39, 0.0 }
 0x2c1   : > { %1066 = vst [vmem:[%s488_s24 + $0x20] sm:$0xff] %v1058_v40  ;;  %1068 = vst [vmem:[%s488_s24 + $0x30] sm:$0xff] %v1060_v41 }
 0x2c2   : > { %1067 = vst [vmem:[%s488_s24 + $0x28] sm:$0xff] %v1059_v42  ;;  %1069 = vst [vmem:[%s488_s24 + $0x38] sm:$0xff] %v1061_v43 }
 0x2c3 PF: > { %s17_s28 = sadd.s32 1, %s1444_s28   ;;  %s1601_s24 = smov %s1436_s26 }
 0x2c4   : > { %p14_p9 = scmp.ge.s32.totalorder %s17_s28, 10   ;;  %s1602_s25 = smov %s1440_s27 }
 0x2c5   : > { %s1603_s26 = smov %s1606_s29  ;;  %s1604_s27 = smov %s1610_s30 }
 0x2c6   :  { %16 = sbr.rel (!%p14_p9) target bundleno = 3 (0x3), region = 96 }

</bundles_post_ra>
